<compile_context>
chip_gen: v7x
topology: tpu7x:2x2x1
jax: 0.10.0
libtpu: 0.0.40
codegen_flags: <defaults>
</compile_context>

<pallas_src>
import jax
import jax.numpy as jnp
from jax.experimental import pallas as pl
from jax.experimental.pallas import tpu as pltpu

# ---- model dims ------------------------------------------------------------
IN, H, OUT = 2, 10, 1
HP = 16                   # hidden padded to a sublane-tile-friendly 16 rows
NEG_SLOPE = 0.01          # torch.nn.LeakyReLU() default

# ---- packed-parameter layout (all regions 16-row aligned) ------------------
ROW_W1, ROW_W2, ROW_W3, ROW_B = 0, 16, 32, 48
P_ROWS, P_COLS = 64, 16   # pads to (64,128) f32 in VMEM: 32 KiB, fetched once

LANE = 128
MAX_TB = 16384            # max batch-tile (lanes) per grid step; ~4-5 MiB VMEM


def _leaky_relu(v):
    # max(v, a*v) == LeakyReLU(v) for 0 < a < 1; 2 VALU ops per vreg.
    return jnp.maximum(v, NEG_SLOPE * v)


def discriminator_kernel(p_ref, x_ref, o_ref):
    # p_ref: (64, 16)  packed params, resident across all grid steps
    # x_ref: (2, TB)   input tile, batch on lanes
    # o_ref: (1, TB)   output tile, batch on lanes (lane-dense store)
    p = p_ref[...]
    x = x_ref[...]

    w2 = p[ROW_W2:ROW_W2 + HP, :]          # (16,16), real block is (10,10)
    w3 = p[ROW_W3:ROW_W3 + HP, :]          # (16,16), real weights in row 0
    b1 = p[ROW_B:ROW_B + HP, 0:1]          # (16,1)
    b2 = p[ROW_B:ROW_B + HP, 1:2]          # (16,1)
    b3 = p[ROW_B:ROW_B + 1, 2:3]           # (1,1)

    # Layer 1: Linear(2,10) + LeakyReLU -- two VPU broadcast FMAs (K=2).
    h = (b1
         + p[ROW_W1:ROW_W1 + HP, 0:1] * x[0:1, :]
         + p[ROW_W1:ROW_W1 + HP, 1:2] * x[1:2, :])
    h = _leaky_relu(h)                                            # (16, TB)

    # Layer 2: Linear(10,10) + LeakyReLU -- MXU, full f32 precision.
    g = jnp.dot(w2, h, preferred_element_type=jnp.float32,
                precision=jax.lax.Precision.HIGHEST) + b2
    g = _leaky_relu(g)                                            # (16, TB)

    # Layer 3: Linear(10,1) + Sigmoid -- MXU; only row 0 of w3 is real.
    y = jnp.dot(w3, g, preferred_element_type=jnp.float32,
                precision=jax.lax.Precision.HIGHEST)              # (16, TB)
    o_ref[...] = jax.nn.sigmoid(y[0:1, :] + b3)                   # (1, TB)


def pack_params(w1, b1, w2, b2, w3, b3):
    """Pack torch-layout params (W:(out,in), b:(out,)) into one (64,16) tile."""
    p = jnp.zeros((P_ROWS, P_COLS), jnp.float32)
    p = p.at[ROW_W1:ROW_W1 + H, 0:IN].set(w1)                    # (10, 2)
    p = p.at[ROW_W2:ROW_W2 + H, 0:H].set(w2)                     # (10, 10)
    p = p.at[ROW_W3:ROW_W3 + OUT, 0:H].set(w3)                   # (1, 10) in row 32
    p = p.at[ROW_B:ROW_B + H, 0:1].set(b1.reshape(H, 1))
    p = p.at[ROW_B:ROW_B + H, 1:2].set(b2.reshape(H, 1))
    p = p.at[ROW_B:ROW_B + OUT, 2:3].set(b3.reshape(OUT, 1))
    return p


def _choose_tb(batch):
    """Pick the batch-tile (in lanes): as large as possible, and an even
    number of grid steps (>=2) so megacore sharding engages on v7x."""
    lanes = pl.cdiv(batch, LANE) * LANE
    if lanes <= 2 * LANE:          # too small to split usefully -> one tile
        return lanes
    steps = 2
    while pl.cdiv(lanes, steps) > MAX_TB:
        steps += 2
    return pl.cdiv(pl.cdiv(lanes, steps), LANE) * LANE


def discriminator_forward(x, packed_params, *, tb=None):
    """x: (B, 2) float32 -> (B, 1) float32 (matches output.view(-1, 1))."""
    B = x.shape[0]
    if tb is None:
        tb = _choose_tb(B)
    assert tb % LANE == 0, tb

    # Batch on lanes. (Transpose kept for the lane-dense layout; negligible
    # traffic at these feature widths and fusable upstream in a larger model.)
    x_t = x.astype(jnp.float32).T                    # (2, B)

    out_t = pl.pallas_call(
        discriminator_kernel,
        out_shape=jax.ShapeDtypeStruct((1, B), jnp.float32),
        grid=(pl.cdiv(B, tb),),
        in_specs=[
            pl.BlockSpec((P_ROWS, P_COLS), lambda i: (0, 0)),  # params resident
            pl.BlockSpec((IN, tb), lambda i: (0, i)),          # batch tile in
        ],
        out_specs=pl.BlockSpec((1, tb), lambda i: (0, i)),     # lane-dense out
        compiler_params=pltpu.CompilerParams(
            dimension_semantics=("parallel",),                 # megacore on v7x
            vmem_limit_bytes=32 * 1024 * 1024),
    )(packed_params, x_t)

    return out_t[0, :].reshape(B, 1)


# ---- init + pure-JAX reference ---------------------------------------------
def init_params(key):
    """PyTorch nn.Linear default init; weights stored (out_features, in_features)."""
    ks = jax.random.split(key, 6)

    def linear(kw, kb, fan_in, fan_out):
        bound = float(fan_in) ** -0.5
        w = jax.random.uniform(kw, (fan_out, fan_in), jnp.float32, -bound, bound)
        b = jax.random.uniform(kb, (fan_out,), jnp.float32, -bound, bound)
        return w, b

    w1, b1 = linear(ks[0], ks[1], IN, H)
    w2, b2 = linear(ks[2], ks[3], H, H)
    w3, b3 = linear(ks[4], ks[5], H, OUT)
    return (w1, b1, w2, b2, w3, b3)


def reference_forward(x, params):
    w1, b1, w2, b2, w3, b3 = params
    h = jnp.where(x @ w1.T + b1 >= 0, x @ w1.T + b1, NEG_SLOPE * (x @ w1.T + b1))
    g = h @ w2.T + b2
    g = jnp.where(g >= 0, g, NEG_SLOPE * g)
    return jax.nn.sigmoid(g @ w3.T + b3).reshape(-1, 1)


if __name__ == "__main__":
    key = jax.random.PRNGKey(0)
    k_x, k_x2, k_p = jax.random.split(key, 3)

    params = init_params(k_p)
    packed = pack_params(*params)

    # Small test (single grid step, partial block in both input and output).
    B = 8
    x = jax.random.normal(k_x, (B, 2), dtype=jnp.float32)
    out = jax.block_until_ready(discriminator_forward(x, packed))
    ref = reference_forward(x, params)
    assert out.shape == (B, 1), out.shape
    assert jnp.allclose(out, ref, atol=1e-5, rtol=1e-5)

    # Medium test: auto tile picker -> 2 grid steps (megacore path) + ragged
    # final block handled by Pallas masking.
    B2 = 300
    x2 = jax.random.normal(k_x2, (B2, 2), dtype=jnp.float32)
    out2 = jax.block_until_ready(discriminator_forward(x2, packed))
    ref2 = reference_forward(x2, params)
    assert out2.shape == (B2, 1), out2.shape
    assert jnp.allclose(out2, ref2, atol=1e-5, rtol=1e-5)

    # Explicit small tile -> 3 grid steps, exercises the pipelined multi-tile path.
    out3 = jax.block_until_ready(discriminator_forward(x2, packed, tb=128))
    assert out3.shape == (B2, 1), out3.shape
    assert jnp.allclose(out3, ref2, atol=1e-5, rtol=1e-5)

    print("KERNEL_OK")
</pallas_src>

<mosaic_0001>
module attributes {stable_mosaic.version = 11 : i64} {
  func.func @discriminator_kernel(%arg0: i32, %arg1: memref<64x16xf32, #tpu.memory_space<vmem>>, %arg2: memref<2x128xf32, #tpu.memory_space<vmem>>, %arg3: memref<1x128xf32, #tpu.memory_space<vmem>>) attributes {dimension_semantics = [#tpu.dimension_semantics<parallel>], iteration_bounds = array<i64: 1>, scalar_prefetch = 0 : i64, scratch_operands = 0 : i64, tpu.core_type = #tpu.core_type<tc>, window_params = [{pipeline_mode = #tpu.pipeline_mode<synchronous>, transform_indices = @transform_0, window_bounds = array<i64: 64, 16>}, {transform_indices = @transform_1, window_bounds = array<i64: 2, 128>}, {transform_indices = @transform_2, window_bounds = array<i64: 1, 128>}]} {
    %c0 = arith.constant 0 : index
    %c0_0 = arith.constant 0 : index
    %0 = vector.load %arg1[%c0, %c0_0] : memref<64x16xf32, #tpu.memory_space<vmem>>, vector<64x16xf32>
    %c0_1 = arith.constant 0 : index
    %c0_2 = arith.constant 0 : index
    %1 = vector.load %arg2[%c0_1, %c0_2] : memref<2x128xf32, #tpu.memory_space<vmem>>, vector<2x128xf32>
    %2 = vector.extract_strided_slice %0 {offsets = [16, 0], sizes = [16, 16], strides = [1, 1]} : vector<64x16xf32> to vector<16x16xf32>
    %3 = vector.extract_strided_slice %0 {offsets = [32, 0], sizes = [16, 16], strides = [1, 1]} : vector<64x16xf32> to vector<16x16xf32>
    %4 = vector.extract_strided_slice %0 {offsets = [48, 0], sizes = [16, 1], strides = [1, 1]} : vector<64x16xf32> to vector<16x1xf32>
    %5 = vector.extract_strided_slice %0 {offsets = [48, 1], sizes = [16, 1], strides = [1, 1]} : vector<64x16xf32> to vector<16x1xf32>
    %6 = vector.extract_strided_slice %0 {offsets = [48, 2], sizes = [1, 1], strides = [1, 1]} : vector<64x16xf32> to vector<1x1xf32>
    %7 = vector.extract_strided_slice %0 {offsets = [0, 0], sizes = [16, 1], strides = [1, 1]} : vector<64x16xf32> to vector<16x1xf32>
    %8 = vector.extract_strided_slice %1 {offsets = [0, 0], sizes = [1, 128], strides = [1, 1]} : vector<2x128xf32> to vector<1x128xf32>
    %9 = vector.broadcast %7 : vector<16x1xf32> to vector<16x128xf32>
    %10 = vector.broadcast %8 : vector<1x128xf32> to vector<16x128xf32>
    %11 = arith.mulf %9, %10 : vector<16x128xf32>
    %12 = vector.broadcast %4 : vector<16x1xf32> to vector<16x128xf32>
    %13 = arith.addf %12, %11 : vector<16x128xf32>
    %14 = vector.extract_strided_slice %0 {offsets = [0, 1], sizes = [16, 1], strides = [1, 1]} : vector<64x16xf32> to vector<16x1xf32>
    %15 = vector.extract_strided_slice %1 {offsets = [1, 0], sizes = [1, 128], strides = [1, 1]} : vector<2x128xf32> to vector<1x128xf32>
    %16 = vector.broadcast %14 : vector<16x1xf32> to vector<16x128xf32>
    %17 = vector.broadcast %15 : vector<1x128xf32> to vector<16x128xf32>
    %18 = arith.mulf %16, %17 : vector<16x128xf32>
    %19 = arith.addf %13, %18 : vector<16x128xf32>
    %cst = arith.constant 0.00999999977 : f32
    %20 = vector.broadcast %cst : f32 to vector<16x128xf32>
    %21 = arith.mulf %20, %19 : vector<16x128xf32>
    %22 = arith.maximumf %19, %21 : vector<16x128xf32>
    %cst_3 = arith.constant dense<0.000000e+00> : vector<16x128xf32>
    %23 = tpu.matmul %2, %22, %cst_3 {dimension_numbers = #tpu.dot_dimension_numbers<[1], [0], [0], [1], [0, 0, 1, 1], [], []>, precision = #tpu.contract_precision<fp32>} : vector<16x16xf32>, vector<16x128xf32>, vector<16x128xf32> -> vector<16x128xf32>
    %24 = vector.broadcast %5 : vector<16x1xf32> to vector<16x128xf32>
    %25 = arith.addf %23, %24 : vector<16x128xf32>
    %cst_4 = arith.constant 0.00999999977 : f32
    %26 = vector.broadcast %cst_4 : f32 to vector<16x128xf32>
    %27 = arith.mulf %26, %25 : vector<16x128xf32>
    %28 = arith.maximumf %25, %27 : vector<16x128xf32>
    %cst_5 = arith.constant dense<0.000000e+00> : vector<16x128xf32>
    %29 = tpu.matmul %3, %28, %cst_5 {dimension_numbers = #tpu.dot_dimension_numbers<[1], [0], [0], [1], [0, 0, 1, 1], [], []>, precision = #tpu.contract_precision<fp32>} : vector<16x16xf32>, vector<16x128xf32>, vector<16x128xf32> -> vector<16x128xf32>
    %30 = vector.extract_strided_slice %29 {offsets = [0, 0], sizes = [1, 128], strides = [1, 1]} : vector<16x128xf32> to vector<1x128xf32>
    %31 = vector.broadcast %6 : vector<1x1xf32> to vector<1x128xf32>
    %32 = arith.addf %30, %31 : vector<1x128xf32>
    %33 = arith.negf %32 : vector<1x128xf32>
    %34 = math.exp %33 : vector<1x128xf32>
    %cst_6 = arith.constant 1.000000e+00 : f32
    %35 = vector.broadcast %cst_6 : f32 to vector<1x128xf32>
    %36 = arith.addf %35, %34 : vector<1x128xf32>
    %37 = arith.divf %35, %36 : vector<1x128xf32>
    %c0_7 = arith.constant 0 : index
    %c0_8 = arith.constant 0 : index
    %38 = vector.load %arg3[%c0_7, %c0_8] : memref<1x128xf32, #tpu.memory_space<vmem>>, vector<1x128xf32>
    tpu.vector_store %arg3[%c0_7, %c0_8], %37 {strides = array<i32>} : memref<1x128xf32, #tpu.memory_space<vmem>>, vector<1x128xf32>,
    return
  }
  func.func @transform_0(%arg0: i32) -> (i32, i32) {
    %c0_i32 = arith.constant 0 : i32
    %c0_i32_0 = arith.constant 0 : i32
    %c0_i32_1 = arith.constant 0 : i32
    return %c0_i32, %c0_i32_0 : i32, i32
  }
  func.func @transform_1(%arg0: i32) -> (i32, i32) {
    %c0_i32 = arith.constant 0 : i32
    %c0_i32_0 = arith.constant 0 : i32
    return %c0_i32, %arg0 : i32, i32
  }
  func.func @transform_2(%arg0: i32) -> (i32, i32) {
    %c0_i32 = arith.constant 0 : i32
    %c0_i32_0 = arith.constant 0 : i32
    return %c0_i32, %arg0 : i32, i32
  }
}

</mosaic_0001>

<bundles_post_ra>
// kernel: tpu_custom_call.1
= control target key start
LH: loop header
LB: loop body
LE: loop exit
PB: predicated region body
PF: predicated region fallthrough
CT: control target
= control target key end

     0   :  { %v1349_v2 = vmov 0   ;;  %s1427_s0 = inlined_call_operand.vmem [shape: f32[64,16], index: 0, kind: input, shape index: {}]   ;;  %s1428_s1 = inlined_call_operand.vmem [shape: f32[2,8], index: 1, kind: input, shape index: {}]   ;;  %s1429_s2 = inlined_call_operand.hbm [shape: f32[1,8], index: 2, kind: output, shape index: {}]  }
   0x1   :  { %v1371_v0 = vld [vmem:[%s1427_s0 + $0x30] sm:$0xff]  ;;  %v12_v1 = vld [vmem:[%s1427_s0] sm:$0xff]  ;;  %1316 = vset.pattern.permute.xlu1 %v1349_v2  ;;  %1315 = vset.pattern.permute.xlu0 %v1349_v2 }
   0x2   :  { %7 = vsyncpa [#allocation3], 0  ;;  %39 = vperm.xlu1 %1316, %v1371_v0   ;;  %23 = vperm.xlu0 %1315, %v12_v1   ;;  %v19_v3 = vld [vmem:[%s1427_s0 + $0x38] sm:$0xff]  ;;  %v13_v4 = vld [vmem:[%s1427_s0 + $0x8] sm:$0xff]  ;;  %v1350_v5 = vmov 1   ;;  %vm77_vm0 = vcmask 130048   ;;  %v31_v13 = vlaneseq }
   0x3   :  { %v14_v6 = vld [vmem:[%s1427_s0 + $0x10] sm:$0xff]  ;;  %v20_v16 = vld [vmem:[%s1428_s1] sm:$0x3]  ;;  %v15_v17 = vld [vmem:[%s1427_s0 + $0x18] sm:$0xff] }
   0x4   :  { %v79_v7 = vsel %vm77_vm0, %v14_v6, 0  ;;  %v32_v14 = vshrl.u32 %v31_v13, 7  ;;  %v82_v22 = vsel %vm77_vm0, %v15_v17, 0  ;;  %v16_v59 = vld [vmem:[%s1427_s0 + $0x20] sm:$0xff] }
   0x5   :  { %v1388_v8 = vand.u32 4294901760, %v79_v7  ;;  %v161_v25 = vand.u32 4294901760, %v82_v22  ;;  %v591_v60 = vsel %vm77_vm0, %v16_v59, 0 }
   0x6   :  { %44 = vperm.xlu1 %1316, %v19_v3   ;;  %28 = vperm.xlu0 %1315, %v13_v4   ;;  %v33_v15 = vsub.s32 0, %v32_v14  ;;  %v59_v21 = vsub.s32 1, %v32_v14  ;;  %v663_v61 = vand.u32 4294901760, %v591_v60 }
   0x7   :  { %v1391_v9 = vsub.f32 %v79_v7, %v1388_v8  ;;  %v162_v31 = vsub.f32 %v82_v22, %v161_v25 }
   0x8   :  { %v34_v20 = vrot.slane %v20_v16, %v33_v15  ;;  %v60_v28 = vrot.slane %v20_v16, %v59_v21  ;;  %v664_v62 = vsub.f32 %v591_v60, %v663_v61 }
   0x9   :  { %v153_v10 = vand.u32 4294901760, %v1391_v9  ;;  %v163_v40 = vand.u32 4294901760, %v162_v31 }
   0xa   :  { %1318 = vset.pattern.permute.xlu1 %v1350_v5  ;;  %1317 = vset.pattern.permute.xlu0 %v1350_v5  ;;  %v665_v63 = vand.u32 4294901760, %v664_v62 }
   0xb   :  { %54 = vperm.xlu1 %1318, %v13_v4   ;;  %50 = vperm.xlu0 %1317, %v12_v1   ;;  %v154_v11 = vsub.f32 %v1391_v9, %v153_v10  ;;  %v164_v45 = vsub.f32 %v162_v31, %v163_v40  ;;  %v17_v4 = vld [vmem:[%s1427_s0 + $0x28] sm:$0xff]  ;;  %s1352_s0 = smov [#allocation2]  }
   0xc   :  { %v666_v1 = vsub.f32 %v664_v62, %v665_v63  ;;  %v594_v5 = vsel %vm77_vm0, %v17_v4, 0  ;;  %s1110_s26 = sshll.u32 %s1352_s0, 4  ;;  %s1111_s26 = int_to_ptr.vmem [resolvable:$true] %s1110_s26 }
   0xd   :  { %v155_v12 = vand.u32 4294901760, %v154_v11  ;;  %v165_v49 = vand.u32 4294901760, %v164_v45  ;;  %v673_v6 = vand.u32 4294901760, %v594_v5  ;;  %s1325_s27 = scalar_lea.vmem %s1111_s26, 16  ;;  %s1329_s28 = scalar_lea.vmem %s1111_s26, 32 }
   0xe   :  { %v667_v2 = vand.u32 4294901760, %v666_v1  ;;  %p1326_p0 = scmp.ne.s32.totalorder %s1111_s26, %s1325_s27  ;;  %p1330_p1 = scmp.lt.s32.totalorder %s1111_s26, %s1111_s26 }
   0xf   :  { %70 = vperm.xlu1 %1318, %v1371_v0   ;;  %74 = vperm.xlu0 %1317, %v19_v3   ;;  %v1351_v3 = vmov 2   ;;  %p1331_p2 = scmp.lt.s32.totalorder %s1329_s28, %s1325_s27 }
  0x10   :  { %1171 = vmatprep.mubr.f32.mxu0 %v155_v12  ;;  %1213 = vmatprep.mubr.f32.mxu1 %v667_v2 }
  0x11   :  { %p1332_p3 = por %p1331_p2, %p1330_p1 }
  0x13   :  { %1319 = vset.pattern.permute.xlu1 %v1351_v3  ;;  %1320 = vset.pattern.permute.xlu0 %v1351_v3  ;;  %p1333_p4 = pnand %p1332_p3, %p1326_p0 }
  0x14   :  { %1093 = vperm.xlu1 %1319, %v1371_v0  }
  0x81   :  { %v40_v18 = vpop.permute.xlu1 %39  ;;  %v24_v19 = vpop.permute.xlu0 %23 }
  0x82   :  { %v35_v26 = vmul.f32 %v34_v20, %v24_v19 }
  0x84   :  { %v47_v32 = vadd.f32 %v40_v18, %v35_v26 }
  0x85   :  { %v45_v23 = vpop.permute.xlu1 %44  ;;  %v29_v24 = vpop.permute.xlu0 %28 }
  0x86   :  { %v36_v27 = vmul.f32 %v34_v20, %v29_v24 }
  0x88   :  { %v48_v33 = vadd.f32 %v45_v23, %v36_v27 }
  0x8a   :  { %v55_v29 = vpop.permute.xlu1 %54  ;;  %v51_v30 = vpop.permute.xlu0 %50 }
  0x8b   :  { %v62_v34 = vmul.f32 %v60_v28, %v55_v29  ;;  %v61_v35 = vmul.f32 %v60_v28, %v51_v30 }
  0x8d   :  { %v64_v36 = vadd.f32 %v62_v34, %v48_v33  ;;  %v63_v37 = vadd.f32 %v61_v35, %v47_v32 }
  0x8e   :  { %v75_v7 = vpop.permute.xlu0 %74 }
  0x8f   :  { %v66_v38 = vmul.f32 0.01, %v64_v36  ;;  %v65_v39 = vmul.f32 0.01, %v63_v37 }
  0x91   :  { %v68_v41 = vmax.f32 %v64_v36, %v66_v38  ;;  %v67_v42 = vmax.f32 %v63_v37, %v65_v39 }
  0x93   :  { %v88_v43 = vand.u32 4294901760, %v68_v41  ;;  %v85_v44 = vand.u32 4294901760, %v67_v42 }
  0x95   :  { %v180_v46 = vsub.f32 %v68_v41, %v88_v43  ;;  %v1251_v47 = vpack.c.bf16 %v88_v43, %v85_v44  ;;  %v173_v48 = vsub.f32 %v67_v42, %v85_v44 }
  0x97   :  { %1252 = vmatprep.subr.bf16.mxu0 %v1251_v47  ;;  %v174_v50 = vand.u32 4294901760, %v173_v48  ;;  %v181_v51 = vand.u32 4294901760, %v180_v46  ;;  %v1259_v57 = vpack.c.bf16 %v180_v46, %v173_v48 }
  0x98   :  { %1254 = vmatpush3.bf16.msra.mxu0 %v1251_v47 }
  0x99   :  { %v175_v52 = vsub.f32 %v173_v48, %v174_v50  ;;  %v182_v53 = vsub.f32 %v180_v46, %v181_v51  ;;  %v1267_v58 = vpack.c.bf16 %v181_v51, %v174_v50 }
  0x9b   :  { %1172 = vmatmul.mubr.f32.vlgmr.msra.gmra.mrb[0].mxu0 %v165_v49  ;;  %v176_v54 = vand.u32 4294901760, %v175_v52  ;;  %v183_v55 = vand.u32 4294901760, %v182_v53 }
  0x9c   :  { %1178 = vmatprep.mubr.f32.mxu0 %v1388_v8 }
  0x9d   :  { %v1255_v56 = vpack.c.bf16 %v183_v55, %v176_v54 }
  0x9f   :  { %1256 = vmatprep.subr.bf16.mxu0 %v1255_v56 }
  0xa0   :  { %1258 = vmatpush3.bf16.msra.mxu0 %v1255_v56 }
  0xa1   :  { %1260 = vmatprep.subr.bf16.mxu0 %v1259_v57 }
  0xa3   :  { %1179 = vmatmul.mubr.f32.vlgmr.msra.gmra.mrb[0].mxu0 %v161_v25 }
  0xa4   :  { %1262 = vmatpush3.bf16.msra.mxu0 %v1259_v57  ;;  %1185 = vmatprep.mubr.f32.mxu0 %v1391_v9  ;;  %v674_v9 = vsub.f32 %v594_v5, %v673_v6 }
  0xa5   :  { %1264 = vmatprep.subr.bf16.mxu0 %v1251_v47 }
  0xa6   :  { %v675_v16 = vand.u32 4294901760, %v674_v9 }
  0xa8   :  { %v676_v20 = vsub.f32 %v674_v9, %v675_v16 }
  0xab   :  { %1186 = vmatmul.mubr.f32.vlgmr.msra.gmra.mrb[0].mxu0 %v162_v31 }
  0xac   :  { %1266 = vmatpush3.bf16.msra.mxu0 %v1251_v47  ;;  %1192 = vmatprep.mubr.f32.mxu0 %v153_v10  ;;  %v71_v10 = vpop.permute.xlu1 %70 }
  0xad   :  { %1268 = vmatprep.subr.bf16.mxu0 %v1267_v58 }
  0xb0   :  { %v1094_v50 = vpop.permute.xlu1 %1093 }
  0xb3   :  { %1193 = vmatmul.mubr.f32.vlgmr.msra.gmra.mrb[0].mxu0 %v163_v40 }
  0xb4   :  { %1270 = vmatpush3.bf16.msra.mxu0 %v1267_v58  ;;  %1199 = vmatprep.mubr.f32.mxu0 %v1388_v8 }
  0xb5   :  { %1272 = vmatprep.subr.bf16.mxu0 %v1251_v47 }
  0xbb   :  { %1200 = vmatmul.mubr.f32.vlgmr.msra.gmra.mrb[0].mxu0 %v161_v25 }
  0xbc   :  { %1274 = vmatpush3.bf16.msra.mxu0 %v1251_v47  ;;  %1206 = vmatprep.mubr.f32.mxu0 %v1388_v8 }
  0xc3   :  { %1207 = vmatmul.mubr.f32.vlgmr.msra.gmra.mrb[0].mxu0 %v161_v25  ;;  %v677_v25 = vand.u32 4294901760, %v676_v20 }
 0x196   :  { %v1208_v8 = vpop.f32.mrb[0].mxu0 }
 0x197   :  { %v1299_v11 = vadd.f32 %v1208_v8, %v75_v7  ;;  %v576_v12 = vpop.f32.mrb[1].mxu0 }
 0x198   :  { %v1300_v13 = vadd.f32 %v576_v12, %v71_v10 }
 0x199   :  { %v587_v14 = vmul.f32 0.01, %v1299_v11 }
 0x19a   :  { %v586_v15 = vmul.f32 0.01, %v1300_v13 }
 0x19b   :  { %v589_v17 = vmax.f32 %v1299_v11, %v587_v14 }
 0x19c   :  { %v588_v18 = vmax.f32 %v1300_v13, %v586_v15 }
 0x19d   :  { %v600_v0 = vand.u32 4294901760, %v589_v17 }
 0x19e   :  { %v597_v19 = vand.u32 4294901760, %v588_v18 }
 0x19f   :  { %v691_v21 = vsub.f32 %v589_v17, %v600_v0 }
 0x1a0   :  { %v1275_v22 = vpack.c.bf16 %v600_v0, %v597_v19  ;;  %v684_v23 = vsub.f32 %v588_v18, %v597_v19 }
 0x1a1   :  { %v692_v24 = vand.u32 4294901760, %v691_v21 }
 0x1a2   :  { %1276 = vmatprep.subr.bf16.mxu1 %v1275_v22  ;;  %v685_v26 = vand.u32 4294901760, %v684_v23  ;;  %v1283_v27 = vpack.c.bf16 %v691_v21, %v684_v23 }
 0x1a3   :  { %1278 = vmatpush3.bf16.msra.mxu1 %v1275_v22  ;;  %v693_v28 = vsub.f32 %v691_v21, %v692_v24 }
 0x1a4   :  { %v686_v29 = vsub.f32 %v684_v23, %v685_v26  ;;  %v1291_v30 = vpack.c.bf16 %v692_v24, %v685_v26 }
 0x1a5   :  { %v694_v31 = vand.u32 4294901760, %v693_v28 }
 0x1a6   :  { %1214 = vmatmul.mubr.f32.vlgmr.msra.gmra.mrb[0].mxu1 %v677_v25  ;;  %v687_v32 = vand.u32 4294901760, %v686_v29 }
 0x1a7   :  { %1220 = vmatprep.mubr.f32.mxu1 %v663_v61 }
 0x1a8   :  { %v1279_v33 = vpack.c.bf16 %v694_v31, %v687_v32 }
 0x1aa   :  { %1280 = vmatprep.subr.bf16.mxu1 %v1279_v33 }
 0x1ab   :  { %1282 = vmatpush3.bf16.msra.mxu1 %v1279_v33 }
 0x1ac   :  { %1284 = vmatprep.subr.bf16.mxu1 %v1283_v27 }
 0x1ae   :  { %1221 = vmatmul.mubr.f32.vlgmr.msra.gmra.mrb[2].mxu1 %v673_v6 }
 0x1af   :  { %1286 = vmatpush3.bf16.msra.mxu1 %v1283_v27  ;;  %1227 = vmatprep.mubr.f32.mxu1 %v664_v62 }
 0x1b0   :  { %1288 = vmatprep.subr.bf16.mxu1 %v1275_v22 }
 0x1b2   :  { %1228 = vmatmul.mubr.f32.vlgmr.msra.gmra.mrb[4].mxu1 %v674_v9 }
 0x1b3   :  { %1290 = vmatpush3.bf16.msra.mxu1 %v1275_v22  ;;  %1234 = vmatprep.mubr.f32.mxu1 %v665_v63 }
 0x1b4   :  { %1292 = vmatprep.subr.bf16.mxu1 %v1291_v30 }
 0x1b6   :  { %1235 = vmatmul.mubr.f32.vlgmr.msra.gmra.mrb[6].mxu1 %v675_v16 }
 0x1b7   :  { %1294 = vmatpush3.bf16.msra.mxu1 %v1291_v30  ;;  %1241 = vmatprep.mubr.f32.mxu1 %v663_v61 }
 0x1b8   :  { %1296 = vmatprep.subr.bf16.mxu1 %v1275_v22 }
 0x1ba   :  { %1242 = vmatmul.mubr.f32.vlgmr.msra.gmra.mrb[8].mxu1 %v673_v6 }
 0x1bb   :  { %1298 = vmatpush3.bf16.msra.mxu1 %v1275_v22  ;;  %1248 = vmatprep.mubr.f32.mxu1 %v663_v61 }
 0x1be   :  { %1249 = vmatmul.mubr.f32.vlgmr.msra.gmra.mrb[10].mxu1 %v673_v6 }
 0x279   :  { %v1215_v34 = vpop.f32.mrb[0].mxu1 }
 0x27a   :  { %v669_v35 = vpop.f32.mrb[1].mxu1 }
 0x281   :  { %v1222_v36 = vpop.f32.mrb[2].mxu1 }
 0x282   :  { %v759_v37 = vpop.f32.mrb[3].mxu1 }
 0x283   :  { %v760_v38 = vadd.f32 %v759_v37, %v669_v35 }
 0x285   :  { %v1229_v39 = vpop.f32.mrb[4].mxu1 }
 0x286   :  { %v840_v40 = vpop.f32.mrb[5].mxu1 }
 0x287   :  { %v841_v41 = vadd.f32 %v840_v40, %v760_v38 }
 0x289   :  { %v1236_v42 = vpop.f32.mrb[6].mxu1 }
 0x28a   :  { %v921_v43 = vpop.f32.mrb[7].mxu1 }
 0x28b   :  { %v922_v44 = vadd.f32 %v921_v43, %v841_v41 }
 0x28d   :  { %v1243_v45 = vpop.f32.mrb[8].mxu1 }
 0x28e   :  { %v1005_v46 = vpop.f32.mrb[9].mxu1 }
 0x28f   :  { %v1006_v47 = vadd.f32 %v1005_v46, %v922_v44 }
 0x291   :  { %v1250_v48 = vpop.f32.mrb[10].mxu1 }
 0x292   :  { %v1083_v49 = vpop.f32.mrb[11].mxu1 }
 0x293   :  { %v1084_v51 = vadd.f32 %v1083_v49, %v1006_v47 }
 0x295   :  { %v1096_v52 = vadd.f32 %v1094_v50, %v1084_v51 }
 0x297   :  { %v1118_v53 = vmul.f32 -1.442695, %v1096_v52 }
 0x299   :  { %1321 = vpow2.f32 %v1118_v53 }
 0x2a3   :  { %v1322_v54 = vpop.eup %1321 }
 0x2a4   :  { %v1100_v55 = vadd.f32 1.0, %v1322_v54 }
 0x2a6   :  { %1323 = vrcp.f32 %v1100_v55 }
 0x2b0   :  { %v1324_v56 = vpop.eup %1323 }
 0x2b1   :  { %1103 = vst [vmem:[#allocation2] sm:$0x1] %v1324_v56 }
 0x2b2   :  { %1336 = shalt.err (!%p1333_p4)
}
 0x2b3   :  { %s1337_s3 = scalar_lea.hbm %s1429_s2, 16 }
 0x2b4   :  { %p1338_p5 = scmp.ne.s32.totalorder %s1429_s2, %s1337_s3  ;;  %p1341_p6 = scmp.lt.u32.totalorder %s1337_s3, %s1429_s2 }
 0x2b6   :  { %p1343_p7 = pnand %p1341_p6, %p1338_p5 }
 0x2b8   :  { %1346 = shalt.err (!%p1343_p7)
}
 0x2b9   :  { %1113 = dma.vmem_to_hbm [thread:$0]  %s1111_s26, 16, %s1429_s2, [#allocation3]  }
 0x2ba   :  { %1347 = dma.done.wait [#allocation3], 16  }
 0x2bb   :  { %1348 = vsyncadd [#allocation3], 4294967280 }
 0x2bc   :  { %1117 = vsyncpa [#allocation3], 1 }

</bundles_post_ra>
